<compile_context>
chip_gen: v7x
topology: tpu7x:2x2x1
jax: 0.10.0
libtpu: 0.0.40
codegen_flags: <defaults>
</compile_context>

<pallas_src>
import jax
import jax.numpy as jnp
from jax.experimental import pallas as pl
from jax.experimental.pallas import tpu as pltpu


# Scoped-VMEM cap: explicit per review; 48 MiB leaves headroom on v7x (64 MiB
# physical) and is well under v5e/v6e's 128 MiB.
_VMEM_LIMIT = 48 * 1024 * 1024


def _seq_tile(seq_len, bytes_per_step, budget_bytes):
    """Largest sequence tile that divides seq_len and fits the byte budget."""
    ts = int(max(1, min(seq_len, budget_bytes // max(1, bytes_per_step))))
    while seq_len % ts:
        ts -= 1
    return ts


def _row_tile(n, max_tile=1024):
    """Row tile for kernel C (multiple of 8, divides n, VMEM friendly)."""
    if n <= max_tile:
        return n
    for t in range(max_tile, 7, -1):
        if n % t == 0 and t % 8 == 0:
            return t
    return n  # TODO(synk): pad N for awkward (prime-ish) S*B at production size


# ----------------------------------------------------------------------------
# Kernel A: LayerNorm + slow_net projection, all heads fused into ONE matmul.
#   x is read from HBM once; output laid out (H, S, 4, B, D) with slabs
#   [q | k | v | beta-broadcast] on a leading axis (no lane slicing in B).
# ----------------------------------------------------------------------------
def ln_proj_kernel(x_ref, g_ref, b_ref, w_ref, o_ref):
    H, tsa, _, B, D = o_ref.shape
    x = x_ref[...].astype(jnp.float32)                    # (tsa, B, E)
    mu = jnp.mean(x, axis=-1, keepdims=True)
    var = jnp.mean((x - mu) ** 2, axis=-1, keepdims=True)
    y = (x - mu) * jax.lax.rsqrt(var + 1e-5) * g_ref[...] + b_ref[...]
    y2 = y.reshape(tsa * B, x.shape[-1])
    # single MXU-shaped projection over all heads / slabs
    p = jnp.dot(y2, w_ref[...], preferred_element_type=jnp.float32)
    # split the wide result once per tile (NOT per timestep) into leading slabs
    for h in range(H):
        for r in range(4):
            off = (h * 4 + r) * D
            blk = p[:, off:off + D].reshape(1, tsa, 1, B, D).astype(o_ref.dtype)
            o_ref[pl.ds(h, 1), :, pl.ds(r, 1), :, :] = blk


def ln_slow_proj(x, gamma, beta, w_packed, num_head, dim_head,
                 *, out_dtype=jnp.float32):
    S, B, E = x.shape
    H, D = num_head, dim_head
    bytes_per_step = (B * E * 4 + H * 4 * B * D * 4) * 2   # in + out, dbl-buffered
    tsa = _seq_tile(S, bytes_per_step, budget_bytes=8 << 20)
    return pl.pallas_call(
        ln_proj_kernel,
        out_shape=jax.ShapeDtypeStruct((H, S, 4, B, D), out_dtype),
        grid_spec=pltpu.PrefetchScalarGridSpec(
            num_scalar_prefetch=0,
            grid=(S // tsa,),
            in_specs=[pl.BlockSpec((tsa, B, E), lambda s: (s, 0, 0)),
                      pl.BlockSpec((1, E), lambda s: (0, 0)),
                      pl.BlockSpec((1, E), lambda s: (0, 0)),
                      pl.BlockSpec((E, H * 4 * D), lambda s: (0, 0))],
            out_specs=pl.BlockSpec((H, tsa, 4, B, D),
                                   lambda s: (0, s, 0, 0, 0))),
        compiler_params=pltpu.CompilerParams(
            dimension_semantics=("parallel",),
            vmem_limit_bytes=_VMEM_LIMIT),
    )(x, gamma, beta, w_packed)


# ----------------------------------------------------------------------------
# Kernel B: recurrent delta-rule fast-weight update with tanh feedback.
#   grid = (H, S//TS):  H parallel (megacore), S arbitrary (sequential carry).
#   W (B,D,D) and z (B,D) live in VMEM scratch, carried across S-tiles.
# ----------------------------------------------------------------------------
def rec_delta_kernel(qkvb_ref, r_ref, o_ref, fw_ref, z_ref):
    # qkvb_ref: (TS, 4, B, D)   r_ref: (4, D, D)   o_ref: (TS, B, D)
    TS = qkvb_ref.shape[0]

    @pl.when(pl.program_id(1) == 0)
    def _init():                                           # W_0 = 0, state_0 = 0
        fw_ref[...] = jnp.zeros_like(fw_ref)
        z_ref[...] = jnp.zeros_like(z_ref)

    r_q = r_ref[0]
    r_k = r_ref[1]
    r_v = r_ref[2]
    r_b = r_ref[3]                                         # rb broadcast over cols

    def step(t, carry):
        z = z_ref[...]                                     # (B, D)
        fw = fw_ref[...]                                   # (B, D, D)
        slab = qkvb_ref[t]                                 # (4, B, D) leading-axis
        q_l = slab[0] + jnp.dot(z, r_q, preferred_element_type=jnp.float32)
        k_l = slab[1] + jnp.dot(z, r_k, preferred_element_type=jnp.float32)
        v = slab[2] + jnp.dot(z, r_v, preferred_element_type=jnp.float32)
        b_l = slab[3] + jnp.dot(z, r_b, preferred_element_type=jnp.float32)

        # exact softmax (approx reciprocal removed per correctness review)
        q_e = jnp.exp(q_l - jnp.max(q_l, axis=-1, keepdims=True))
        q = q_e * pl.reciprocal(jnp.sum(q_e, axis=-1, keepdims=True), approx=False)
        k_e = jnp.exp(k_l - jnp.max(k_l, axis=-1, keepdims=True))
        k = k_e * pl.reciprocal(jnp.sum(k_e, axis=-1, keepdims=True), approx=False)
        beta = jax.nn.sigmoid(b_l)                         # (B, D): lanes identical

        k_col = k[:, :, None]
        q_col = q[:, :, None]
        v_old = jnp.sum(k_col * fw, axis=1)                # k . W_old
        q_w = jnp.sum(q_col * fw, axis=1)                  # q . W_old (same pass)
        delta = beta * (v - v_old)
        qk = jnp.sum(q * k, axis=-1, keepdims=True)
        # rank-1 identity: q.(W + k(x)delta) = q.W + (q.k)*delta
        z_new = jnp.tanh(q_w + qk * delta)                 # W update off z path

        fw_ref[...] = fw + k_col * delta[:, None, :]       # rank-1 W update
        z_ref[...] = z_new
        o_ref[pl.ds(t, 1), :, :] = z_new[None, :, :]
        return carry

    jax.lax.fori_loop(0, TS, step, 0, unroll=max(1, min(4, TS)))


def rec_delta(qkvb, r_stack, *, seq_tile=None):
    H, S, _, B, D = qkvb.shape
    if seq_tile is None:
        # input tile + output tile, double-buffered (state scratch is constant)
        bytes_per_step = (4 * B * D * qkvb.dtype.itemsize + B * D * 4) * 2
        seq_tile = _seq_tile(S, bytes_per_step, budget_bytes=8 << 20)
    assert S % seq_tile == 0
    return pl.pallas_call(
        rec_delta_kernel,
        out_shape=jax.ShapeDtypeStruct((H, S, B, D), jnp.float32),
        grid_spec=pltpu.PrefetchScalarGridSpec(
            num_scalar_prefetch=0,
            grid=(H, S // seq_tile),
            in_specs=[pl.BlockSpec((None, seq_tile, 4, B, D),
                                   lambda h, s: (h, s, 0, 0, 0)),
                      pl.BlockSpec((None, 4, D, D),
                                   lambda h, s: (h, 0, 0, 0))],
            out_specs=pl.BlockSpec((None, seq_tile, B, D),
                                   lambda h, s: (h, s, 0, 0)),
            scratch_shapes=[pltpu.VMEM((B, D, D), jnp.float32),   # fast weights
                            pltpu.VMEM((B, D), jnp.float32)]),    # state z
        compiler_params=pltpu.CompilerParams(
            dimension_semantics=("parallel", "arbitrary"),
            vmem_limit_bytes=_VMEM_LIMIT),
    )(qkvb, r_stack)


# ----------------------------------------------------------------------------
# Kernel C: out_linear (bias-free) + residual, ONE contraction over K = H*D.
# ----------------------------------------------------------------------------
def out_proj_kernel(z_ref, w_ref, x_ref, o_ref):
    H = z_ref.shape[0]
    zcat = jnp.concatenate([z_ref[h] for h in range(H)], axis=-1)  # (tn, H*D)
    o_ref[...] = x_ref[...] + jnp.dot(zcat, w_ref[...],
                                      preferred_element_type=jnp.float32)


def out_proj(z3, w_out_flat, x2d):
    H, N, D = z3.shape
    E = x2d.shape[1]
    tn = _row_tile(N)
    return pl.pallas_call(
        out_proj_kernel,
        out_shape=jax.ShapeDtypeStruct((N, E), jnp.float32),
        grid_spec=pltpu.PrefetchScalarGridSpec(
            num_scalar_prefetch=0,
            grid=(N // tn,),
            in_specs=[pl.BlockSpec((H, tn, D), lambda r: (0, r, 0)),
                      pl.BlockSpec((H * D, E), lambda r: (0, 0)),
                      pl.BlockSpec((tn, E), lambda r: (r, 0))],
            out_specs=pl.BlockSpec((tn, E), lambda r: (r, 0))),
        compiler_params=pltpu.CompilerParams(
            dimension_semantics=("parallel",),
            vmem_limit_bytes=_VMEM_LIMIT),
    )(z3, w_out_flat, x2d)


# ----------------------------------------------------------------------------
# Parameters (packed forms precomputed here, hoisted out of forward()).
# ----------------------------------------------------------------------------
def init_params(key, num_head, dim_head, in_dim):
    H, D, E = num_head, dim_head, in_dim
    C = 3 * D + 1
    ks = jax.random.split(key, 6)
    std = 1.0 / (D ** 0.5)
    w_slow = (jax.random.normal(ks[0], (H, E, C)) * (E ** -0.5)).astype(jnp.float32)
    w_out = (jax.random.normal(ks[1], (H, D, E)) * ((H * D) ** -0.5)).astype(jnp.float32)
    R_q = (jax.random.normal(ks[2], (H, D, D)) * std).astype(jnp.float32)
    R_k = (jax.random.normal(ks[3], (H, D, D)) * std).astype(jnp.float32)
    R_v = (jax.random.normal(ks[4], (H, D, D)) * std).astype(jnp.float32)
    r_b = (jax.random.normal(ks[5], (H, D)) * std).astype(jnp.float32)

    # packed slow-net weight (E, H*4*D): per head [q | k | v | beta broadcast]
    blocks = []
    for h in range(H):
        blocks.append(w_slow[h, :, 0:3 * D])
        blocks.append(jnp.tile(w_slow[h, :, 3 * D:3 * D + 1], (1, D)))
    w_slow_packed = jnp.concatenate(blocks, axis=1)

    # stacked recurrent matrices (H, 4, D, D); slab 3 = r_b broadcast over cols
    rb_mat = jnp.broadcast_to(r_b[:, :, None], (H, D, D))
    R_stack = jnp.stack([R_q, R_k, R_v, rb_mat], axis=1)

    return dict(ln_g=jnp.ones((1, E), jnp.float32),
                ln_b=jnp.zeros((1, E), jnp.float32),
                w_slow=w_slow, w_out=w_out,
                R_q=R_q, R_k=R_k, R_v=R_v, r_b=r_b,
                w_slow_packed=w_slow_packed, R_stack=R_stack)


def forward(params, x, num_head, dim_head, *, seq_tile=None,
            stream_dtype=jnp.float32):
    S, B, E = x.shape
    H, D = num_head, dim_head
    # Kernel A: fused LayerNorm + slow_net (all heads, one matmul, x read once).
    qkvb = ln_slow_proj(x, params["ln_g"], params["ln_b"],
                        params["w_slow_packed"], H, D, out_dtype=stream_dtype)
    # Kernel B: S-tiled recurrence, W/z carried in VMEM scratch.
    z = rec_delta(qkvb, params["R_stack"], seq_tile=seq_tile)   # (H, S, B, D)
    # Kernel C: single K=H*D out_linear + residual (free reshapes only).
    z3 = z.reshape(H, S * B, D)
    x2d = x.reshape(S * B, E)
    out2d = out_proj(z3, params["w_out"].reshape(H * D, E), x2d)
    return out2d.reshape(S, B, E)


# ----------------------------------------------------------------------------
# Pure-JAX reference (structural correctness check)
# ----------------------------------------------------------------------------
def forward_ref(params, x, H, D):
    S, B, E = x.shape
    hp = jax.lax.Precision.HIGHEST
    mu = jnp.mean(x, -1, keepdims=True)
    var = jnp.mean((x - mu) ** 2, -1, keepdims=True)
    y = (x - mu) * jax.lax.rsqrt(var + 1e-5) * params["ln_g"][0] + params["ln_b"][0]
    qkvb = jnp.einsum("sbe,hec->sbhc", y, params["w_slow"], precision=hp)
    q_s, k_s = qkvb[..., :D], qkvb[..., D:2 * D]
    v_s, b_s = qkvb[..., 2 * D:3 * D], qkvb[..., 3 * D:]
    Rq, Rk, Rv, rb = params["R_q"], params["R_k"], params["R_v"], params["r_b"]
    W = jnp.zeros((B, H, D, D), jnp.float32)
    z = jnp.zeros((B, H, D), jnp.float32)
    outs = []
    for t in range(S):
        q = q_s[t] + jnp.einsum("bhd,hde->bhe", z, Rq, precision=hp)
        k = k_s[t] + jnp.einsum("bhd,hde->bhe", z, Rk, precision=hp)
        v = v_s[t] + jnp.einsum("bhd,hde->bhe", z, Rv, precision=hp)
        beta = jax.nn.sigmoid(b_s[t] + jnp.sum(z * rb[None], -1, keepdims=True))
        q = jax.nn.softmax(q, -1)
        k = jax.nn.softmax(k, -1)
        v_old = jnp.einsum("bhd,bhde->bhe", k, W, precision=hp)
        delta = beta * (v - v_old)
        W = W + jnp.einsum("bhd,bhe->bhde", k, delta, precision=hp)
        z = jnp.tanh(jnp.einsum("bhd,bhde->bhe", q, W, precision=hp))
        outs.append(z)
    zs = jnp.stack(outs, 0).reshape(S, B, H * D)
    return x + jnp.einsum("sbk,ke->sbe", zs, params["w_out"].reshape(H * D, E),
                          precision=hp)


if __name__ == "__main__":
    num_head, dim_head, in_dim = 2, 16, 32
    seq_len, batch = 8, 2

    key = jax.random.PRNGKey(0)
    k_param, k_x = jax.random.split(key)
    params = init_params(k_param, num_head, dim_head, in_dim)
    x = jax.random.normal(k_x, (seq_len, batch, in_dim), dtype=jnp.float32)

    ref = jax.block_until_ready(forward_ref(params, x, num_head, dim_head))

    # 1) f32 streaming, auto sequence tile (single S-tile at this toy size)
    out = jax.block_until_ready(forward(params, x, num_head, dim_head))
    assert out.shape == (seq_len, batch, in_dim)
    assert bool(jnp.all(jnp.isfinite(out)))
    d1 = float(jnp.max(jnp.abs(out - ref)))
    assert d1 < 3e-2, f"f32 mismatch vs reference: {d1}"

    # 2) force multiple S-tiles to exercise the VMEM-scratch W/z carry
    out_tiled = jax.block_until_ready(
        forward(params, x, num_head, dim_head, seq_tile=2))
    d2 = float(jnp.max(jnp.abs(out_tiled - ref)))
    assert d2 < 3e-2, f"S-tiled mismatch vs reference: {d2}"

    # 3) bf16-streamed A->B intermediate (halved HBM traffic); looser tolerance
    out_bf16 = jax.block_until_ready(
        forward(params, x, num_head, dim_head, stream_dtype=jnp.bfloat16))
    d3 = float(jnp.max(jnp.abs(out_bf16 - ref)))
    assert d3 < 8e-2, f"bf16-streamed mismatch vs reference: {d3}"

    print("KERNEL_OK")
</pallas_src>

<mosaic_0001>
module attributes {stable_mosaic.version = 11 : i64} {
  func.func @ln_proj_kernel(%arg0: i32, %arg1: memref<8x2x32xf32, #tpu.memory_space<vmem>>, %arg2: memref<1x32xf32, #tpu.memory_space<vmem>>, %arg3: memref<1x32xf32, #tpu.memory_space<vmem>>, %arg4: memref<32x128xf32, #tpu.memory_space<vmem>>, %arg5: memref<2x8x4x2x16xf32, #tpu.memory_space<vmem>>) attributes {dimension_semantics = [#tpu.dimension_semantics<parallel>], iteration_bounds = array<i64: 1>, scalar_prefetch = 0 : i64, scratch_operands = 0 : i64, tpu.core_type = #tpu.core_type<tc>, window_params = [{transform_indices = @transform_0, window_bounds = array<i64: 8, 2, 32>}, {pipeline_mode = #tpu.pipeline_mode<synchronous>, transform_indices = @transform_1, window_bounds = array<i64: 1, 32>}, {pipeline_mode = #tpu.pipeline_mode<synchronous>, transform_indices = @transform_2, window_bounds = array<i64: 1, 32>}, {pipeline_mode = #tpu.pipeline_mode<synchronous>, transform_indices = @transform_3, window_bounds = array<i64: 32, 128>}, {transform_indices = @transform_4, window_bounds = array<i64: 2, 8, 4, 2, 16>}]} {
    %c0 = arith.constant 0 : index
    %c0_0 = arith.constant 0 : index
    %c0_1 = arith.constant 0 : index
    %0 = vector.load %arg1[%c0, %c0_0, %c0_1] : memref<8x2x32xf32, #tpu.memory_space<vmem>>, vector<8x2x32xf32>
    %cst = arith.constant dense<0.000000e+00> : vector<8x2xf32>
    %1 = vector.multi_reduction <add>, %0, %cst [2] : vector<8x2x32xf32> to vector<8x2xf32>
    %2 = vector.shape_cast %1 : vector<8x2xf32> to vector<8x2x1xf32>
    %cst_2 = arith.constant 3.200000e+01 : f32
    %3 = vector.broadcast %cst_2 : f32 to vector<8x2x1xf32>
    %4 = arith.divf %2, %3 : vector<8x2x1xf32>
    %5 = vector.broadcast %4 : vector<8x2x1xf32> to vector<8x2x32xf32>
    %6 = arith.subf %0, %5 : vector<8x2x32xf32>
    %7 = arith.mulf %6, %6 : vector<8x2x32xf32>
    %cst_3 = arith.constant dense<0.000000e+00> : vector<8x2xf32>
    %8 = vector.multi_reduction <add>, %7, %cst_3 [2] : vector<8x2x32xf32> to vector<8x2xf32>
    %9 = vector.shape_cast %8 : vector<8x2xf32> to vector<8x2x1xf32>
    %cst_4 = arith.constant 3.200000e+01 : f32
    %10 = vector.broadcast %cst_4 : f32 to vector<8x2x1xf32>
    %11 = arith.divf %9, %10 : vector<8x2x1xf32>
    %12 = vector.broadcast %4 : vector<8x2x1xf32> to vector<8x2x32xf32>
    %13 = arith.subf %0, %12 : vector<8x2x32xf32>
    %cst_5 = arith.constant 9.99999974E-6 : f32
    %14 = vector.broadcast %cst_5 : f32 to vector<8x2x1xf32>
    %15 = arith.addf %11, %14 : vector<8x2x1xf32>
    %16 = math.rsqrt %15 : vector<8x2x1xf32>
    %17 = vector.broadcast %16 : vector<8x2x1xf32> to vector<8x2x32xf32>
    %18 = arith.mulf %13, %17 : vector<8x2x32xf32>
    %c0_6 = arith.constant 0 : index
    %c0_7 = arith.constant 0 : index
    %19 = vector.load %arg2[%c0_6, %c0_7] : memref<1x32xf32, #tpu.memory_space<vmem>>, vector<1x32xf32>
    %20 = vector.shape_cast %19 : vector<1x32xf32> to vector<1x1x32xf32>
    %21 = vector.broadcast %20 : vector<1x1x32xf32> to vector<8x2x32xf32>
    %22 = arith.mulf %18, %21 : vector<8x2x32xf32>
    %c0_8 = arith.constant 0 : index
    %c0_9 = arith.constant 0 : index
    %23 = vector.load %arg3[%c0_8, %c0_9] : memref<1x32xf32, #tpu.memory_space<vmem>>, vector<1x32xf32>
    %24 = vector.shape_cast %23 : vector<1x32xf32> to vector<1x1x32xf32>
    %25 = vector.broadcast %24 : vector<1x1x32xf32> to vector<8x2x32xf32>
    %26 = arith.addf %22, %25 : vector<8x2x32xf32>
    %27 = vector.shape_cast %26 : vector<8x2x32xf32> to vector<16x32xf32>
    %c0_10 = arith.constant 0 : index
    %c0_11 = arith.constant 0 : index
    %28 = vector.load %arg4[%c0_10, %c0_11] : memref<32x128xf32, #tpu.memory_space<vmem>>, vector<32x128xf32>
    %cst_12 = arith.constant dense<0.000000e+00> : vector<16x128xf32>
    %29 = tpu.matmul %27, %28, %cst_12 {dimension_numbers = #tpu.dot_dimension_numbers<[1], [0], [0], [1], [0, 0, 1, 1], [], []>} : vector<16x32xf32>, vector<32x128xf32>, vector<16x128xf32> -> vector<16x128xf32>
    %30 = vector.extract_strided_slice %29 {offsets = [0, 0], sizes = [16, 16], strides = [1, 1]} : vector<16x128xf32> to vector<16x16xf32>
    %31 = vector.shape_cast %30 : vector<16x16xf32> to vector<1x8x1x2x16xf32>
    %c0_13 = arith.constant 0 : index
    %c0_14 = arith.constant 0 : index
    %c0_15 = arith.constant 0 : index
    %c0_16 = arith.constant 0 : index
    %c0_17 = arith.constant 0 : index
    %32 = vector.load %arg5[%c0_13, %c0_14, %c0_15, %c0_16, %c0_17] : memref<2x8x4x2x16xf32, #tpu.memory_space<vmem>>, vector<1x8x1x2x16xf32>
    tpu.vector_store %arg5[%c0_13, %c0_14, %c0_15, %c0_16, %c0_17], %31 {strides = array<i32>} : memref<2x8x4x2x16xf32, #tpu.memory_space<vmem>>, vector<1x8x1x2x16xf32>,
    %33 = vector.extract_strided_slice %29 {offsets = [0, 16], sizes = [16, 16], strides = [1, 1]} : vector<16x128xf32> to vector<16x16xf32>
    %34 = vector.shape_cast %33 : vector<16x16xf32> to vector<1x8x1x2x16xf32>
    %c0_18 = arith.constant 0 : index
    %c0_19 = arith.constant 0 : index
    %c1 = arith.constant 1 : index
    %c0_20 = arith.constant 0 : index
    %c0_21 = arith.constant 0 : index
    %35 = vector.load %arg5[%c0_18, %c0_19, %c1, %c0_20, %c0_21] : memref<2x8x4x2x16xf32, #tpu.memory_space<vmem>>, vector<1x8x1x2x16xf32>
    tpu.vector_store %arg5[%c0_18, %c0_19, %c1, %c0_20, %c0_21], %34 {strides = array<i32>} : memref<2x8x4x2x16xf32, #tpu.memory_space<vmem>>, vector<1x8x1x2x16xf32>,
    %36 = vector.extract_strided_slice %29 {offsets = [0, 32], sizes = [16, 16], strides = [1, 1]} : vector<16x128xf32> to vector<16x16xf32>
    %37 = vector.shape_cast %36 : vector<16x16xf32> to vector<1x8x1x2x16xf32>
    %c0_22 = arith.constant 0 : index
    %c0_23 = arith.constant 0 : index
    %c2 = arith.constant 2 : index
    %c0_24 = arith.constant 0 : index
    %c0_25 = arith.constant 0 : index
    %38 = vector.load %arg5[%c0_22, %c0_23, %c2, %c0_24, %c0_25] : memref<2x8x4x2x16xf32, #tpu.memory_space<vmem>>, vector<1x8x1x2x16xf32>
    tpu.vector_store %arg5[%c0_22, %c0_23, %c2, %c0_24, %c0_25], %37 {strides = array<i32>} : memref<2x8x4x2x16xf32, #tpu.memory_space<vmem>>, vector<1x8x1x2x16xf32>,
    %39 = vector.extract_strided_slice %29 {offsets = [0, 48], sizes = [16, 16], strides = [1, 1]} : vector<16x128xf32> to vector<16x16xf32>
    %40 = vector.shape_cast %39 : vector<16x16xf32> to vector<1x8x1x2x16xf32>
    %c0_26 = arith.constant 0 : index
    %c0_27 = arith.constant 0 : index
    %c3 = arith.constant 3 : index
    %c0_28 = arith.constant 0 : index
    %c0_29 = arith.constant 0 : index
    %41 = vector.load %arg5[%c0_26, %c0_27, %c3, %c0_28, %c0_29] : memref<2x8x4x2x16xf32, #tpu.memory_space<vmem>>, vector<1x8x1x2x16xf32>
    tpu.vector_store %arg5[%c0_26, %c0_27, %c3, %c0_28, %c0_29], %40 {strides = array<i32>} : memref<2x8x4x2x16xf32, #tpu.memory_space<vmem>>, vector<1x8x1x2x16xf32>,
    %42 = vector.extract_strided_slice %29 {offsets = [0, 64], sizes = [16, 16], strides = [1, 1]} : vector<16x128xf32> to vector<16x16xf32>
    %43 = vector.shape_cast %42 : vector<16x16xf32> to vector<1x8x1x2x16xf32>
    %c1_30 = arith.constant 1 : index
    %c0_31 = arith.constant 0 : index
    %c0_32 = arith.constant 0 : index
    %c0_33 = arith.constant 0 : index
    %c0_34 = arith.constant 0 : index
    %44 = vector.load %arg5[%c1_30, %c0_31, %c0_32, %c0_33, %c0_34] : memref<2x8x4x2x16xf32, #tpu.memory_space<vmem>>, vector<1x8x1x2x16xf32>
    tpu.vector_store %arg5[%c1_30, %c0_31, %c0_32, %c0_33, %c0_34], %43 {strides = array<i32>} : memref<2x8x4x2x16xf32, #tpu.memory_space<vmem>>, vector<1x8x1x2x16xf32>,
    %45 = vector.extract_strided_slice %29 {offsets = [0, 80], sizes = [16, 16], strides = [1, 1]} : vector<16x128xf32> to vector<16x16xf32>
    %46 = vector.shape_cast %45 : vector<16x16xf32> to vector<1x8x1x2x16xf32>
    %c1_35 = arith.constant 1 : index
    %c0_36 = arith.constant 0 : index
    %c1_37 = arith.constant 1 : index
    %c0_38 = arith.constant 0 : index
    %c0_39 = arith.constant 0 : index
    %47 = vector.load %arg5[%c1_35, %c0_36, %c1_37, %c0_38, %c0_39] : memref<2x8x4x2x16xf32, #tpu.memory_space<vmem>>, vector<1x8x1x2x16xf32>
    tpu.vector_store %arg5[%c1_35, %c0_36, %c1_37, %c0_38, %c0_39], %46 {strides = array<i32>} : memref<2x8x4x2x16xf32, #tpu.memory_space<vmem>>, vector<1x8x1x2x16xf32>,
    %48 = vector.extract_strided_slice %29 {offsets = [0, 96], sizes = [16, 16], strides = [1, 1]} : vector<16x128xf32> to vector<16x16xf32>
    %49 = vector.shape_cast %48 : vector<16x16xf32> to vector<1x8x1x2x16xf32>
    %c1_40 = arith.constant 1 : index
    %c0_41 = arith.constant 0 : index
    %c2_42 = arith.constant 2 : index
    %c0_43 = arith.constant 0 : index
    %c0_44 = arith.constant 0 : index
    %50 = vector.load %arg5[%c1_40, %c0_41, %c2_42, %c0_43, %c0_44] : memref<2x8x4x2x16xf32, #tpu.memory_space<vmem>>, vector<1x8x1x2x16xf32>
    tpu.vector_store %arg5[%c1_40, %c0_41, %c2_42, %c0_43, %c0_44], %49 {strides = array<i32>} : memref<2x8x4x2x16xf32, #tpu.memory_space<vmem>>, vector<1x8x1x2x16xf32>,
    %51 = vector.extract_strided_slice %29 {offsets = [0, 112], sizes = [16, 16], strides = [1, 1]} : vector<16x128xf32> to vector<16x16xf32>
    %52 = vector.shape_cast %51 : vector<16x16xf32> to vector<1x8x1x2x16xf32>
    %c1_45 = arith.constant 1 : index
    %c0_46 = arith.constant 0 : index
    %c3_47 = arith.constant 3 : index
    %c0_48 = arith.constant 0 : index
    %c0_49 = arith.constant 0 : index
    %53 = vector.load %arg5[%c1_45, %c0_46, %c3_47, %c0_48, %c0_49] : memref<2x8x4x2x16xf32, #tpu.memory_space<vmem>>, vector<1x8x1x2x16xf32>
    tpu.vector_store %arg5[%c1_45, %c0_46, %c3_47, %c0_48, %c0_49], %52 {strides = array<i32>} : memref<2x8x4x2x16xf32, #tpu.memory_space<vmem>>, vector<1x8x1x2x16xf32>,
    return
  }
  func.func @transform_0(%arg0: i32) -> (i32, i32, i32) {
    %c0_i32 = arith.constant 0 : i32
    %c0_i32_0 = arith.constant 0 : i32
    %c0_i32_1 = arith.constant 0 : i32
    return %arg0, %c0_i32, %c0_i32_0 : i32, i32, i32
  }
  func.func @transform_1(%arg0: i32) -> (i32, i32) {
    %c0_i32 = arith.constant 0 : i32
    %c0_i32_0 = arith.constant 0 : i32
    %c0_i32_1 = arith.constant 0 : i32
    return %c0_i32, %c0_i32_0 : i32, i32
  }
  func.func @transform_2(%arg0: i32) -> (i32, i32) {
    %c0_i32 = arith.constant 0 : i32
    %c0_i32_0 = arith.constant 0 : i32
    %c0_i32_1 = arith.constant 0 : i32
    return %c0_i32, %c0_i32_0 : i32, i32
  }
  func.func @transform_3(%arg0: i32) -> (i32, i32) {
    %c0_i32 = arith.constant 0 : i32
    %c0_i32_0 = arith.constant 0 : i32
    %c0_i32_1 = arith.constant 0 : i32
    return %c0_i32, %c0_i32_0 : i32, i32
  }
  func.func @transform_4(%arg0: i32) -> (i32, i32, i32, i32, i32) {
    %c0_i32 = arith.constant 0 : i32
    %c0_i32_0 = arith.constant 0 : i32
    %c0_i32_1 = arith.constant 0 : i32
    %c0_i32_2 = arith.constant 0 : i32
    %c0_i32_3 = arith.constant 0 : i32
    return %c0_i32, %arg0, %c0_i32_0, %c0_i32_1, %c0_i32_2 : i32, i32, i32, i32, i32
  }
}

</mosaic_0001>

<bundles_post_ra>
// kernel: tpu_custom_call.1
= control target key start
LH: loop header
LB: loop body
LE: loop exit
PB: predicated region body
PF: predicated region fallthrough
CT: control target
= control target key end

     0   :  { %9 = vsyncpa [#allocation3], 0  ;;  %s1086_s0 = inlined_call_operand.hbm [shape: f32[8,2,32], index: 0, kind: input, shape index: {}]   ;;  %s1087_s1 = inlined_call_operand.vmem [shape: f32[1,32], index: 1, kind: input, shape index: {}]   ;;  %s1088_s2 = inlined_call_operand.vmem [shape: f32[1,32], index: 2, kind: input, shape index: {}]   ;;  %s1089_s3 = inlined_call_operand.hbm [shape: f32[32,128], index: 3, kind: input, shape index: {}]   ;;  %s1090_s4 = inlined_call_operand.hbm [shape: f32[2,8,4,2,16], index: 4, kind: output, shape index: {}]  }
   0x1   :  { %10 = vsyncpa [#allocation6], 0 }
   0x2   :  { %11 = vsyncpa [#allocation4], 0  ;;  %s805_s15 = smov [#allocation2]   ;;  %s733_s19 = scalar_lea.hbm %s1086_s0, 256 }
   0x3   :  { %s17_s16 = sshll.u32 %s805_s15, 4  ;;  %p734_p0 = scmp.ne.s32.totalorder %s1086_s0, %s733_s19  ;;  %s18_s16 = int_to_ptr.vmem [resolvable:$true] %s17_s16 }
   0x4   :  { %p737_p1 = scmp.lt.u32.totalorder %s733_s19, %s1086_s0 }
   0x6   :  { %p739_p2 = pnand %p737_p1, %p734_p0 }
   0x8   :  { %742 = shalt.err (!%p739_p2)
}
   0x9   :  { %s743_s24 = scalar_lea.vmem %s18_s16, 256  ;;  %p748_p4 = scmp.lt.s32.totalorder %s18_s16, %s18_s16 }
   0xa   :  { %p744_p3 = scmp.ne.s32.totalorder %s18_s16, %s743_s24  ;;  %p749_p5 = scmp.lt.s32.totalorder %s743_s24, %s743_s24 }
   0xc   :  { %p750_p6 = por %p749_p5, %p748_p4 }
   0xe   :  { %p751_p7 = pnand %p750_p6, %p744_p3 }
  0x10   :  { %754 = shalt.err (!%p751_p7)
}
  0x11   :  { %s806_s25 = smov 32   ;;  %s807_s26 = smov 2  }
  0x12   :  { %23 = dma.hbm_to_vmem [thread:$0]  %s1086_s0, 256, %s18_s16, [#allocation3], %s806_s25, %s806_s25, %s807_s26  }
  0x13   :  { %s808_s29 = smov [#allocation5]   ;;  %s755_s7 = scalar_lea.hbm %s1089_s3, 512 }
  0x14   :  { %s33_s30 = sshll.u32 %s808_s29, 4  ;;  %p756_p8 = scmp.ne.s32.totalorder %s1089_s3, %s755_s7  ;;  %s34_s30 = int_to_ptr.vmem [resolvable:$true] %s33_s30 }
  0x15   :  { %p759_p9 = scmp.lt.u32.totalorder %s755_s7, %s1089_s3 }
  0x17   :  { %p761_p10 = pnand %p759_p9, %p756_p8 }
  0x19   :  { %764 = shalt.err (!%p761_p10)
}
  0x1a   :  { %s765_s12 = scalar_lea.vmem %s34_s30, 512  ;;  %p770_p12 = scmp.lt.s32.totalorder %s34_s30, %s34_s30 }
  0x1b   :  { %p766_p11 = scmp.ne.s32.totalorder %s34_s30, %s765_s12  ;;  %p771_p13 = scmp.lt.s32.totalorder %s765_s12, %s765_s12 }
  0x1d   :  { %p772_p0 = por %p771_p13, %p770_p12 }
  0x1f   :  { %p773_p1 = pnand %p772_p0, %p766_p11 }
  0x21   :  { %776 = shalt.err (!%p773_p1)
}
  0x22   :  { %s809_s0 = smov 128   ;;  %s810_s13 = smov 8  }
  0x23   :  { %39 = dma.hbm_to_vmem [thread:$0]  %s1089_s3, 512, %s34_s30, [#allocation6], %s809_s0, %s809_s0, %s810_s13  }
  0x24   :  { %799 = dma.done.wait [#allocation3], 256  }
  0x25   :  { %800 = vsyncadd [#allocation3], 4294967040 }
  0x26   :  { %801 = dma.done.wait [#allocation6], 512  }
  0x27   :  { %802 = vsyncadd [#allocation6], 4294966784  ;;  %vm54_vm0 = vcmask 254976   ;;  %v46_v0 = vld [vmem:[#allocation2] sm:$0x3]  ;;  %v190_v56 = vld [vmem:[#allocation5] sm:$0xff] }
  0x28   :  { %v48_v1 = vld [vmem:[#allocation2 + $0x4] sm:$0x3]  ;;  %v47_v2 = vld [vmem:[#allocation2 + $0x2] sm:$0x3]  ;;  %v55_v3 = vsel %vm54_vm0, %v46_v0, 0.0  ;;  %v191_v57 = vld [vmem:[#allocation5 + $0x8] sm:$0xff] }
  0x29   :  { %v61_v4 = vsel %vm54_vm0, %v48_v1, 0.0  ;;  %v49_v5 = vld [vmem:[#allocation2 + $0x6] sm:$0x3]  ;;  %56 = vadd.xlane.f32.xlu0 %v55_v3  ;;  %v58_v6 = vsel %vm54_vm0, %v47_v2, 0.0  ;;  %v50_v8 = vld [vmem:[#allocation2 + $0x8] sm:$0x3]  ;;  %v695_v58 = vpack.c.bf16 %v191_v57, %v190_v56 }
  0x2a   :  { %62 = vadd.xlane.f32.xlu1 %v61_v4  ;;  %v64_v7 = vsel %vm54_vm0, %v49_v5, 0.0  ;;  %v51_v9 = vld [vmem:[#allocation2 + $0xa] sm:$0x3]  ;;  %v67_v10 = vsel %vm54_vm0, %v50_v8, 0.0  ;;  %v52_v12 = vld [vmem:[#allocation2 + $0xc] sm:$0x3] }
  0x2b   :  { %v70_v11 = vsel %vm54_vm0, %v51_v9, 0.0  ;;  %v53_v13 = vld [vmem:[#allocation2 + $0xe] sm:$0x3]  ;;  %v73_v14 = vsel %vm54_vm0, %v52_v12, 0.0  ;;  %v192_v59 = vld [vmem:[#allocation5 + $0x10] sm:$0xff]  ;;  %696 = vmatprep.subr.bf16.mxu0 %v695_v58  ;;  %vm236_vm1 = vcmask 261120  }
  0x2c   :  { %v76_v15 = vsel %vm54_vm0, %v53_v13, 0.0  ;;  %v193_v60 = vld [vmem:[#allocation5 + $0x18] sm:$0xff]  ;;  %698 = vmatpush3.bf16.msra.mxu0 %v695_v58  ;;  %vm360_vm2 = vcmask 123904   ;;  %s814_s19 = smov 80   ;;  %s815_s20 = smov 64  }
  0x2d   :  { %59 = vadd.xlane.f32.xlu0 %v58_v6  ;;  %v699_v61 = vpack.c.bf16 %v193_v60, %v192_v59  ;;  %s816_s21 = smov 48   ;;  %s817_s22 = smov 16  }
  0x2e   :  { %65 = vadd.xlane.f32.xlu1 %v64_v7  ;;  %s818_s23 = smov [#allocation7]  }
  0x2f   :  { %700 = vmatprep.subr.bf16.mxu0 %v699_v61  ;;  %s661_s24 = sshll.u32 %s818_s23, 4  ;;  %s662_s24 = int_to_ptr.vmem [resolvable:$true] %s661_s24 }
  0x30   :  { %702 = vmatpush3.bf16.msra.mxu0 %v699_v61  ;;  %s777_s27 = scalar_lea.vmem %s662_s24, 2048  ;;  %p782_p3 = scmp.lt.s32.totalorder %s662_s24, %s662_s24 }
  0x31   :  { %68 = vadd.xlane.f32.xlu0 %v67_v10  ;;  %p778_p2 = scmp.ne.s32.totalorder %s662_s24, %s777_s27  ;;  %p783_p4 = scmp.lt.s32.totalorder %s777_s27, %s777_s27 }
  0x32   :  { %71 = vadd.xlane.f32.xlu1 %v70_v11 }
  0x33   :  { %p784_p5 = por %p783_p4, %p782_p3 }
  0x35   :  { %74 = vadd.xlane.f32.xlu0 %v73_v14  ;;  %p785_p6 = pnand %p784_p5, %p778_p2 }
  0x36   :  { %77 = vadd.xlane.f32.xlu1 %v76_v15 }
  0xb6   :  { %v57_v16 = vpop.xlane.xlu0 %56 }
  0xb7   :  { %v63_v17 = vpop.xlane.xlu1 %62  ;;  %v80_v18 = vmul.f32 0.03125, %v57_v16 }
  0xb8   :  { %v82_v19 = vmul.f32 0.03125, %v63_v17 }
  0xb9   :  { %v879_v20 = vsub.f32 %v46_v0, %v80_v18 }
  0xba   :  { %v881_v21 = vsub.f32 %v48_v1, %v82_v19  ;;  %v60_v22 = vpop.xlane.xlu0 %59 }
  0xbb   :  { %v66_v23 = vpop.xlane.xlu1 %65  ;;  %v81_v24 = vmul.f32 0.03125, %v60_v22  ;;  %v96_v26 = vmul.f32 %v879_v20, %v879_v20 }
  0xbc   :  { %v83_v25 = vmul.f32 0.03125, %v66_v23  ;;  %v98_v27 = vmul.f32 %v881_v21, %v881_v21 }
  0xbd   :  { %v887_v28 = vsub.f32 %v47_v2, %v81_v24  ;;  %v104_v30 = vsel %vm54_vm0, %v96_v26, 0.0 }
  0xbe   :  { %v889_v29 = vsub.f32 %v49_v5, %v83_v25  ;;  %105 = vadd.xlane.f32.xlu0 %v104_v30  ;;  %v69_v31 = vpop.xlane.xlu0 %68  ;;  %v110_v33 = vsel %vm54_vm0, %v98_v27, 0.0  ;;  %v674_v25 = vld [vmem:[%s1087_s1] ss:$0 sm:$0xff]  ;;  %v811_v30 = vmov 1983009808   ;;  %s812_s1 = smov 112  }
  0xbf   :  { %v72_v32 = vpop.xlane.xlu1 %71  ;;  %v84_v34 = vmul.f32 0.03125, %v69_v31  ;;  %v97_v36 = vmul.f32 %v887_v28, %v887_v28  ;;  %v205_v31 = vunpack.c.l.s4 %v811_v30 }
  0xc0   :  { %v85_v35 = vmul.f32 0.03125, %v72_v32  ;;  %v99_v37 = vmul.f32 %v889_v29, %v889_v29  ;;  %v207_v32 = vlaneseq }
  0xc1   :  { %v897_v38 = vsub.f32 %v50_v8, %v84_v34  ;;  %v107_v40 = vsel %vm54_vm0, %v97_v36, 0.0 }
  0xc2   :  { %v899_v39 = vsub.f32 %v51_v9, %v85_v35  ;;  %111 = vadd.xlane.f32.xlu0 %v110_v33  ;;  %108 = vadd.xlane.f32.xlu1 %v107_v40  ;;  %v75_v41 = vpop.xlane.xlu0 %74  ;;  %v113_v43 = vsel %vm54_vm0, %v99_v37, 0.0 }
  0xc3   :  { %v78_v42 = vpop.xlane.xlu1 %77  ;;  %v86_v44 = vmul.f32 0.03125, %v75_v41  ;;  %v100_v46 = vmul.f32 %v897_v38, %v897_v38  ;;  %v206_v41 = vunpack.c.0.s8 %v205_v31 }
  0xc4   :  { %v87_v45 = vmul.f32 0.03125, %v78_v42  ;;  %v101_v47 = vmul.f32 %v899_v39, %v899_v39  ;;  %v208_v42 = vshrl.u32 %v207_v32, 7 }
  0xc5   :  { %v907_v48 = vsub.f32 %v52_v12, %v86_v44  ;;  %v116_v50 = vsel %vm54_vm0, %v100_v46, 0.0 }
  0xc6   :  { %v909_v49 = vsub.f32 %v53_v13, %v87_v45  ;;  %114 = vadd.xlane.f32.xlu1 %v113_v43  ;;  %117 = vadd.xlane.f32.xlu0 %v116_v50  ;;  %v119_v51 = vsel %vm54_vm0, %v101_v47, 0.0 }
  0xc7   :  { %v102_v52 = vmul.f32 %v907_v48, %v907_v48 }
  0xc8   :  { %v103_v53 = vmul.f32 %v909_v49, %v909_v49 }
  0xc9   :  { %v122_v54 = vsel %vm54_vm0, %v102_v52, 0.0  ;;  %v930_v52 = vsub.s32 %v206_v41, %v208_v42 }
  0xca   :  { %120 = vadd.xlane.f32.xlu1 %v119_v51  ;;  %123 = vadd.xlane.f32.xlu0 %v122_v54  ;;  %v125_v55 = vsel %vm54_vm0, %v103_v53, 0.0 }
  0xce   :  { %126 = vadd.xlane.f32.xlu1 %v125_v55 }
 0x14b   :  { %v106_v62 = vpop.xlane.xlu0 %105 }
 0x14c   :  { %v128_v63 = vmul.f32 0.03125, %v106_v62 }
 0x14e   :  { %v136_v0 = vadd.f32 1e-05, %v128_v63 }
 0x14f   :  { %v109_v1 = vpop.xlane.xlu1 %108  ;;  %v112_v2 = vpop.xlane.xlu0 %111 }
 0x150   :  { %717 = vrsqrt.f32 %v136_v0  ;;  %v129_v3 = vmul.f32 0.03125, %v109_v1  ;;  %v130_v4 = vmul.f32 0.03125, %v112_v2 }
 0x152   :  { %v137_v5 = vadd.f32 1e-05, %v129_v3  ;;  %v138_v6 = vadd.f32 1e-05, %v130_v4 }
 0x153   :  { %v115_v7 = vpop.xlane.xlu1 %114  ;;  %v118_v8 = vpop.xlane.xlu0 %117 }
 0x154   :  { %719 = vrsqrt.f32 %v137_v5  ;;  %v131_v9 = vmul.f32 0.03125, %v115_v7  ;;  %v132_v10 = vmul.f32 0.03125, %v118_v8 }
 0x155   :  { %721 = vrsqrt.f32 %v138_v6 }
 0x156   :  { %v139_v11 = vadd.f32 1e-05, %v131_v9  ;;  %v140_v12 = vadd.f32 1e-05, %v132_v10 }
 0x157   :  { %v121_v13 = vpop.xlane.xlu1 %120  ;;  %v124_v14 = vpop.xlane.xlu0 %123 }
 0x158   :  { %723 = vrsqrt.f32 %v139_v11  ;;  %v133_v15 = vmul.f32 0.03125, %v121_v13  ;;  %v134_v16 = vmul.f32 0.03125, %v124_v14 }
 0x159   :  { %725 = vrsqrt.f32 %v140_v12 }
 0x15a   :  { %v718_v17 = vpop.eup %717  ;;  %v141_v18 = vadd.f32 1e-05, %v133_v15  ;;  %v142_v19 = vadd.f32 1e-05, %v134_v16 }
 0x15b   :  { %v127_v22 = vpop.xlane.xlu1 %126  ;;  %v152_v24 = vmul.f32 %v718_v17, %v879_v20  ;;  %v675_v20 = vld [vmem:[%s1088_s2] ss:$0 sm:$0xff]  ;;  %s813_s2 = smov 96  }
 0x15c   :  { %727 = vrsqrt.f32 %v141_v18  ;;  %v135_v23 = vmul.f32 0.03125, %v127_v22 }
 0x15d   :  { %729 = vrsqrt.f32 %v142_v19  ;;  %v167_v36 = vmul.f32 %v674_v25, %v152_v24 }
 0x15e   :  { %v720_v26 = vpop.eup %719  ;;  %v143_v27 = vadd.f32 1e-05, %v135_v23 }
 0x15f   :  { %v722_v33 = vpop.eup %721  ;;  %v153_v34 = vmul.f32 %v720_v26, %v887_v28  ;;  %v182_v47 = vadd.f32 %v675_v20, %v167_v36 }
 0x160   :  { %731 = vrsqrt.f32 %v143_v27  ;;  %v154_v35 = vmul.f32 %v722_v33, %v881_v21 }
 0x161   :  { %v168_v37 = vmul.f32 %v674_v25, %v153_v34 }
 0x162   :  { %v724_v40 = vpop.eup %723  ;;  %v169_v45 = vmul.f32 %v674_v25, %v154_v35 }
 0x163   :  { %v726_v43 = vpop.eup %725  ;;  %v155_v44 = vmul.f32 %v724_v40, %v889_v29  ;;  %v183_v46 = vadd.f32 %v675_v20, %v168_v37 }
 0x164   :  { %v156_v28 = vmul.f32 %v726_v43, %v897_v38  ;;  %v184_v55 = vadd.f32 %v675_v20, %v169_v45 }
 0x165   :  { %v170_v50 = vmul.f32 %v674_v25, %v155_v44  ;;  %v202_v21 = vcombine.low %v182_v47, %v183_v46 }
 0x166   :  { %v728_v51 = vpop.eup %727  ;;  %v171_v58 = vmul.f32 %v674_v25, %v156_v28 }
 0x167   :  { %v730_v53 = vpop.eup %729  ;;  %v157_v54 = vmul.f32 %v728_v51, %v899_v39  ;;  %v185_v56 = vadd.f32 %v675_v20, %v170_v50  ;;  %v210_v61 = vrot.slane %v202_v21, %v930_v52 }
 0x168   :  { %v158_v57 = vmul.f32 %v730_v53, %v907_v48  ;;  %v186_v39 = vadd.f32 %v675_v20, %v171_v58 }
 0x169   :  { %v172_v59 = vmul.f32 %v674_v25, %v157_v54  ;;  %v203_v29 = vcombine.low %v184_v55, %v185_v56 }
 0x16a   :  { %v732_v60 = vpop.eup %731  ;;  %v173_v62 = vmul.f32 %v674_v25, %v158_v57 }
 0x16b   :  { %v159_v38 = vmul.f32 %v732_v60, %v909_v49  ;;  %v217_v63 = vrot.slane %v203_v29, %v930_v52  ;;  %v187_v0 = vadd.f32 %v675_v20, %v172_v59 }
 0x16c   :  { %v188_v3 = vadd.f32 %v675_v20, %v173_v62 }
 0x16d   :  { %v174_v1 = vmul.f32 %v674_v25, %v159_v38  ;;  %v218_v2 = vcombine.low %v210_v61, %v217_v63  ;;  %v219_v48 = vcombine.low %v186_v39, %v187_v0 }
 0x16f   :  { %692 = vmatprep.mubr.msk.f32.mxu0 %vm236_vm1, %v218_v2  ;;  %v189_v4 = vadd.f32 %v675_v20, %v174_v1  ;;  %v227_v6 = vrot.slane %v219_v48, %v930_v52 }
 0x171   :  { %v220_v5 = vcombine.low %v188_v3, %v189_v4 }
 0x173   :  { %v234_v7 = vrot.slane %v220_v5, %v930_v52 }
 0x175   :  { %v235_v8 = vcombine.low %v227_v6, %v234_v7 }
 0x177   :  { %693 = vmatmul.mubr.msk.f32.vlgmr.msra.gmra.mrb[0].mxu0 %vm236_vm1, %v235_v8 }
 0x24a   :  { %v694_v9 = vpop.f32.mrb[0].mxu0 }
 0x24b   :  { %v335_v49 = vcombine.high %v694_v9, %v694_v9  ;;  %v342_v10 = vrot.slane %v694_v9, %v930_v52  ;;  %v307_v11 = vpop.f32.mrb[1].mxu0 }
 0x24c   :  { %v318_v12 = vcombine.high %v307_v11, %v307_v11  ;;  %v325_v13 = vrot.slane %v307_v11, %v930_v52 }
 0x24d   :  { %v349_v14 = vrot.slane %v335_v49, %v930_v52  ;;  %v350_v15 = vcombine.high %v342_v10, %v342_v10  ;;  %365 = vst.msk [vmem:[#allocation7 + $0x20] sm:$0x3] %vm360_vm2, %v342_v10  ;;  %v403_v16 = vrot.slane %v342_v10, %v930_v52 }
 0x24e   :  { %v332_v17 = vrot.slane %v318_v12, %v930_v52  ;;  %v333_v18 = vcombine.high %v325_v13, %v325_v13  ;;  %361 = vst.msk [vmem:[#allocation7] sm:$0x3] %vm360_vm2, %v325_v13  ;;  %v375_v24 = vrot.slane %v325_v13, %v930_v52 }
 0x24f   :  { %v351_v19 = vcombine.high %v349_v14, %v349_v14  ;;  %366 = vst.msk [vmem:[#allocation7 + $0x28] sm:$0x3] %vm360_vm2, %v350_v15  ;;  %367 = vst.msk [vmem:[#allocation7 + $0x30] sm:$0x3] %vm360_vm2, %v349_v14  ;;  %v410_v22 = vrot.slane %v350_v15, %v930_v52  ;;  %433 = vrot.lane.b32.xlu0 %v403_v16, %s812_s1  ;;  %v417_v27 = vrot.slane %v349_v14, %v930_v52 }
 0x250   :  { %v334_v23 = vcombine.high %v332_v17, %v332_v17  ;;  %362 = vst.msk [vmem:[#allocation7 + $0x8] sm:$0x3] %vm360_vm2, %v333_v18  ;;  %363 = vst.msk [vmem:[#allocation7 + $0x10] sm:$0x3] %vm360_vm2, %v332_v17  ;;  %v382_v25 = vrot.slane %v333_v18, %v930_v52  ;;  %v389_v26 = vrot.slane %v332_v17, %v930_v52 }
 0x251   :  { %368 = vst.msk [vmem:[#allocation7 + $0x38] sm:$0x3] %vm360_vm2, %v351_v19  ;;  %435 = vrot.lane.b32.xlu1 %v410_v22, %s812_s1  ;;  %v424_v30 = vrot.slane %v351_v19, %v930_v52 }
 0x252   :  { %364 = vst.msk [vmem:[#allocation7 + $0x18] sm:$0x3] %vm360_vm2, %v334_v23  ;;  %v396_v31 = vrot.slane %v334_v23, %v930_v52 }
 0x253   :  { %466 = vrot.lane.b32.xlu0 %v403_v16, %s813_s2 }
 0x255   :  { %468 = vrot.lane.b32.xlu1 %v410_v22, %s813_s2 }
 0x257   :  { %499 = vrot.lane.b32.xlu0 %v403_v16, %s814_s19 }
 0x259   :  { %501 = vrot.lane.b32.xlu1 %v410_v22, %s814_s19 }
 0x25b   :  { %532 = vrot.lane.b32.xlu0 %v403_v16, %s815_s20 }
 0x25d   :  { %534 = vrot.lane.b32.xlu1 %v410_v22, %s815_s20 }
 0x25f   :  { %565 = vrot.lane.b32.xlu0 %v403_v16, %s816_s21 }
 0x261   :  { %567 = vrot.lane.b32.xlu1 %v410_v22, %s816_s21 }
 0x263   :  { %598 = vrot.lane.b32.xlu0 %v403_v16, %s806_s25 }
 0x265   :  { %600 = vrot.lane.b32.xlu1 %v410_v22, %s806_s25 }
 0x267   :  { %631 = vrot.lane.b32.xlu0 %v403_v16, %s817_s22 }
 0x269   :  { %633 = vrot.lane.b32.xlu1 %v410_v22, %s817_s22 }
 0x26b   :  { %425 = vrot.lane.b32.xlu0 %v375_v24, %s812_s1 }
 0x26d   :  { %427 = vrot.lane.b32.xlu1 %v382_v25, %s812_s1 }
 0x26f   :  { %458 = vrot.lane.b32.xlu0 %v375_v24, %s813_s2 }
 0x271   :  { %429 = vrot.lane.b32.xlu1 %v389_v26, %s812_s1 }
 0x273   :  { %491 = vrot.lane.b32.xlu0 %v375_v24, %s814_s19 }
 0x275   :  { %460 = vrot.lane.b32.xlu1 %v382_v25, %s813_s2 }
 0x277   :  { %524 = vrot.lane.b32.xlu0 %v375_v24, %s815_s20 }
 0x279   :  { %493 = vrot.lane.b32.xlu1 %v382_v25, %s814_s19 }
 0x27b   :  { %557 = vrot.lane.b32.xlu0 %v375_v24, %s816_s21 }
 0x27d   :  { %526 = vrot.lane.b32.xlu1 %v382_v25, %s815_s20 }
 0x27f   :  { %590 = vrot.lane.b32.xlu0 %v375_v24, %s806_s25 }
 0x281   :  { %559 = vrot.lane.b32.xlu1 %v382_v25, %s816_s21 }
 0x283   :  { %623 = vrot.lane.b32.xlu0 %v375_v24, %s817_s22 }
 0x285   :  { %592 = vrot.lane.b32.xlu1 %v382_v25, %s806_s25 }
 0x287   :  { %437 = vrot.lane.b32.xlu0 %v417_v27, %s812_s1 }
 0x289   :  { %625 = vrot.lane.b32.xlu1 %v382_v25, %s817_s22 }
 0x28b   :  { %470 = vrot.lane.b32.xlu0 %v417_v27, %s813_s2 }
 0x28d   :  { %439 = vrot.lane.b32.xlu1 %v424_v30, %s812_s1 }
 0x28f   :  { %503 = vrot.lane.b32.xlu0 %v417_v27, %s814_s19 }
 0x291   :  { %472 = vrot.lane.b32.xlu1 %v424_v30, %s813_s2 }
 0x293   :  { %536 = vrot.lane.b32.xlu0 %v417_v27, %s815_s20 }
 0x295   :  { %505 = vrot.lane.b32.xlu1 %v424_v30, %s814_s19 }
 0x297   :  { %569 = vrot.lane.b32.xlu0 %v417_v27, %s816_s21 }
 0x299   :  { %538 = vrot.lane.b32.xlu1 %v424_v30, %s815_s20 }
 0x29b   :  { %602 = vrot.lane.b32.xlu0 %v417_v27, %s806_s25 }
 0x29d   :  { %571 = vrot.lane.b32.xlu1 %v424_v30, %s816_s21 }
 0x29f   :  { %462 = vrot.lane.b32.xlu0 %v389_v26, %s813_s2 }
 0x2a1   :  { %604 = vrot.lane.b32.xlu1 %v424_v30, %s806_s25 }
 0x2a3   :  { %495 = vrot.lane.b32.xlu0 %v389_v26, %s814_s19 }
 0x2a5   :  { %431 = vrot.lane.b32.xlu1 %v396_v31, %s812_s1 }
 0x2a7   :  { %528 = vrot.lane.b32.xlu0 %v389_v26, %s815_s20 }
 0x2a9   :  { %464 = vrot.lane.b32.xlu1 %v396_v31, %s813_s2 }
 0x2ab   :  { %561 = vrot.lane.b32.xlu0 %v389_v26, %s816_s21 }
 0x2ad   :  { %497 = vrot.lane.b32.xlu1 %v396_v31, %s814_s19 }
 0x2af   :  { %594 = vrot.lane.b32.xlu0 %v389_v26, %s806_s25 }
 0x2b1   :  { %530 = vrot.lane.b32.xlu1 %v396_v31, %s815_s20 }
 0x2b3   :  { %627 = vrot.lane.b32.xlu0 %v389_v26, %s817_s22 }
 0x2b5   :  { %563 = vrot.lane.b32.xlu1 %v396_v31, %s816_s21 }
 0x2b7   :  { %635 = vrot.lane.b32.xlu0 %v417_v27, %s817_s22 }
 0x2b9   :  { %596 = vrot.lane.b32.xlu1 %v396_v31, %s806_s25 }
 0x2bd   :  { %629 = vrot.lane.b32.xlu1 %v396_v31, %s817_s22 }
 0x2c1   :  { %v434_v32 = vpop.permute.xlu0 %433  ;;  %637 = vrot.lane.b32.xlu1 %v424_v30, %s817_s22 }
 0x2c2   :  { %454 = vst.msk [vmem:[#allocation7 + $0x22] sm:$0x3] %vm360_vm2, %v434_v32 }
 0x2c3   :  { %v436_v33 = vpop.permute.xlu1 %435 }
 0x2c4   :  { %455 = vst.msk [vmem:[#allocation7 + $0x2a] sm:$0x3] %vm360_vm2, %v436_v33 }
 0x2c5   :  { %v467_v34 = vpop.permute.xlu0 %466 }
 0x2c6   :  { %487 = vst.msk [vmem:[#allocation7 + $0x24] sm:$0x3] %vm360_vm2, %v467_v34 }
 0x2c7   :  { %v469_v35 = vpop.permute.xlu1 %468 }
 0x2c8   :  { %488 = vst.msk [vmem:[#allocation7 + $0x2c] sm:$0x3] %vm360_vm2, %v469_v35 }
 0x2c9   :  { %v500_v36 = vpop.permute.xlu0 %499 }
 0x2ca   :  { %520 = vst.msk [vmem:[#allocation7 + $0x26] sm:$0x3] %vm360_vm2, %v500_v36 }
 0x2cb   :  { %v502_v37 = vpop.permute.xlu1 %501 }
 0x2cc   :  { %521 = vst.msk [vmem:[#allocation7 + $0x2e] sm:$0x3] %vm360_vm2, %v502_v37 }
 0x2cd   :  { %v533_v20 = vpop.permute.xlu0 %532 }
 0x2ce   :  { %553 = vst.msk [vmem:[#allocation7 + $0x60] sm:$0x3] %vm360_vm2, %v533_v20 }
 0x2cf   :  { %v535_v40 = vpop.permute.xlu1 %534 }
 0x2d0   :  { %554 = vst.msk [vmem:[#allocation7 + $0x68] sm:$0x3] %vm360_vm2, %v535_v40 }
 0x2d1   :  { %v566_v41 = vpop.permute.xlu0 %565 }
 0x2d2   :  { %586 = vst.msk [vmem:[#allocation7 + $0x62] sm:$0x3] %vm360_vm2, %v566_v41 }
 0x2d3   :  { %v568_v42 = vpop.permute.xlu1 %567 }
 0x2d4   :  { %587 = vst.msk [vmem:[#allocation7 + $0x6a] sm:$0x3] %vm360_vm2, %v568_v42 }
 0x2d5   :  { %v599_v43 = vpop.permute.xlu0 %598 }
 0x2d6   :  { %619 = vst.msk [vmem:[#allocation7 + $0x64] sm:$0x3] %vm360_vm2, %v599_v43 }
 0x2d7   :  { %v601_v44 = vpop.permute.xlu1 %600 }
 0x2d8   :  { %620 = vst.msk [vmem:[#allocation7 + $0x6c] sm:$0x3] %vm360_vm2, %v601_v44 }
 0x2d9   :  { %v632_v45 = vpop.permute.xlu0 %631 }
 0x2da   :  { %652 = vst.msk [vmem:[#allocation7 + $0x66] sm:$0x3] %vm360_vm2, %v632_v45 }
 0x2db   :  { %v634_v46 = vpop.permute.xlu1 %633 }
 0x2dc   :  { %653 = vst.msk [vmem:[#allocation7 + $0x6e] sm:$0x3] %vm360_vm2, %v634_v46 }
 0x2dd   :  { %v426_v47 = vpop.permute.xlu0 %425 }
 0x2de   :  { %450 = vst.msk [vmem:[#allocation7 + $0x2] sm:$0x3] %vm360_vm2, %v426_v47 }
 0x2df   :  { %v428_v28 = vpop.permute.xlu1 %427 }
 0x2e0   :  { %451 = vst.msk [vmem:[#allocation7 + $0xa] sm:$0x3] %vm360_vm2, %v428_v28 }
 0x2e1   :  { %v459_v50 = vpop.permute.xlu0 %458 }
 0x2e2   :  { %483 = vst.msk [vmem:[#allocation7 + $0x4] sm:$0x3] %vm360_vm2, %v459_v50 }
 0x2e3   :  { %v430_v51 = vpop.permute.xlu1 %429 }
 0x2e4   :  { %452 = vst.msk [vmem:[#allocation7 + $0x12] sm:$0x3] %vm360_vm2, %v430_v51 }
 0x2e5   :  { %v492_v21 = vpop.permute.xlu0 %491 }
 0x2e6   :  { %516 = vst.msk [vmem:[#allocation7 + $0x6] sm:$0x3] %vm360_vm2, %v492_v21 }
 0x2e7   :  { %v461_v52 = vpop.permute.xlu1 %460 }
 0x2e8   :  { %484 = vst.msk [vmem:[#allocation7 + $0xc] sm:$0x3] %vm360_vm2, %v461_v52 }
 0x2e9   :  { %v525_v53 = vpop.permute.xlu0 %524 }
 0x2ea   :  { %549 = vst.msk [vmem:[#allocation7 + $0x40] sm:$0x3] %vm360_vm2, %v525_v53 }
 0x2eb   :  { %v494_v54 = vpop.permute.xlu1 %493 }
 0x2ec   :  { %517 = vst.msk [vmem:[#allocation7 + $0xe] sm:$0x3] %vm360_vm2, %v494_v54 }
 0x2ed   :  { %v558_v55 = vpop.permute.xlu0 %557 }
 0x2ee   :  { %582 = vst.msk [vmem:[#allocation7 + $0x42] sm:$0x3] %vm360_vm2, %v558_v55 }
 0x2ef   :  { %v527_v56 = vpop.permute.xlu1 %526 }
 0x2f0   :  { %550 = vst.msk [vmem:[#allocation7 + $0x48] sm:$0x3] %vm360_vm2, %v527_v56 }
 0x2f1   :  { %v591_v57 = vpop.permute.xlu0 %590 }
 0x2f2   :  { %615 = vst.msk [vmem:[#allocation7 + $0x44] sm:$0x3] %vm360_vm2, %v591_v57 }
 0x2f3   :  { %v560_v58 = vpop.permute.xlu1 %559 }
 0x2f4   :  { %583 = vst.msk [vmem:[#allocation7 + $0x4a] sm:$0x3] %vm360_vm2, %v560_v58 }
 0x2f5   :  { %v624_v59 = vpop.permute.xlu0 %623 }
 0x2f6   :  { %648 = vst.msk [vmem:[#allocation7 + $0x46] sm:$0x3] %vm360_vm2, %v624_v59 }
 0x2f7   :  { %v593_v29 = vpop.permute.xlu1 %592 }
 0x2f8   :  { %616 = vst.msk [vmem:[#allocation7 + $0x4c] sm:$0x3] %vm360_vm2, %v593_v29 }
 0x2f9   :  { %v438_v60 = vpop.permute.xlu0 %437 }
 0x2fa   :  { %456 = vst.msk [vmem:[#allocation7 + $0x32] sm:$0x3] %vm360_vm2, %v438_v60 }
 0x2fb   :  { %v626_v61 = vpop.permute.xlu1 %625 }
 0x2fc   :  { %649 = vst.msk [vmem:[#allocation7 + $0x4e] sm:$0x3] %vm360_vm2, %v626_v61 }
 0x2fd   :  { %v471_v62 = vpop.permute.xlu0 %470 }
 0x2fe   :  { %489 = vst.msk [vmem:[#allocation7 + $0x34] sm:$0x3] %vm360_vm2, %v471_v62 }
 0x2ff   :  { %v440_v38 = vpop.permute.xlu1 %439 }
 0x300   :  { %457 = vst.msk [vmem:[#allocation7 + $0x3a] sm:$0x3] %vm360_vm2, %v440_v38 }
 0x301   :  { %v504_v63 = vpop.permute.xlu0 %503 }
 0x302   :  { %522 = vst.msk [vmem:[#allocation7 + $0x36] sm:$0x3] %vm360_vm2, %v504_v63 }
 0x303   :  { %v473_v0 = vpop.permute.xlu1 %472 }
 0x304   :  { %490 = vst.msk [vmem:[#allocation7 + $0x3c] sm:$0x3] %vm360_vm2, %v473_v0 }
 0x305   :  { %v537_v1 = vpop.permute.xlu0 %536 }
 0x306   :  { %555 = vst.msk [vmem:[#allocation7 + $0x70] sm:$0x3] %vm360_vm2, %v537_v1 }
 0x307   :  { %v506_v2 = vpop.permute.xlu1 %505 }
 0x308   :  { %523 = vst.msk [vmem:[#allocation7 + $0x3e] sm:$0x3] %vm360_vm2, %v506_v2 }
 0x309   :  { %v570_v39 = vpop.permute.xlu0 %569 }
 0x30a   :  { %588 = vst.msk [vmem:[#allocation7 + $0x72] sm:$0x3] %vm360_vm2, %v570_v39 }
 0x30b   :  { %v539_v3 = vpop.permute.xlu1 %538 }
 0x30c   :  { %556 = vst.msk [vmem:[#allocation7 + $0x78] sm:$0x3] %vm360_vm2, %v539_v3 }
 0x30d   :  { %v603_v4 = vpop.permute.xlu0 %602 }
 0x30e   :  { %621 = vst.msk [vmem:[#allocation7 + $0x74] sm:$0x3] %vm360_vm2, %v603_v4 }
 0x30f   :  { %v572_v48 = vpop.permute.xlu1 %571 }
 0x310   :  { %589 = vst.msk [vmem:[#allocation7 + $0x7a] sm:$0x3] %vm360_vm2, %v572_v48 }
 0x311   :  { %v463_v5 = vpop.permute.xlu0 %462 }
 0x312   :  { %485 = vst.msk [vmem:[#allocation7 + $0x14] sm:$0x3] %vm360_vm2, %v463_v5 }
 0x313   :  { %v605_v6 = vpop.permute.xlu1 %604 }
 0x314   :  { %622 = vst.msk [vmem:[#allocation7 + $0x7c] sm:$0x3] %vm360_vm2, %v605_v6 }
 0x315   :  { %v496_v7 = vpop.permute.xlu0 %495 }
 0x316   :  { %518 = vst.msk [vmem:[#allocation7 + $0x16] sm:$0x3] %vm360_vm2, %v496_v7 }
 0x317   :  { %v432_v8 = vpop.permute.xlu1 %431 }
 0x318   :  { %453 = vst.msk [vmem:[#allocation7 + $0x1a] sm:$0x3] %vm360_vm2, %v432_v8 }
 0x319   :  { %v529_v9 = vpop.permute.xlu0 %528 }
 0x31a   :  { %551 = vst.msk [vmem:[#allocation7 + $0x50] sm:$0x3] %vm360_vm2, %v529_v9 }
 0x31b   :  { %v465_v49 = vpop.permute.xlu1 %464 }
 0x31c   :  { %486 = vst.msk [vmem:[#allocation7 + $0x1c] sm:$0x3] %vm360_vm2, %v465_v49 }
 0x31d   :  { %v562_v10 = vpop.permute.xlu0 %561 }
 0x31e   :  { %584 = vst.msk [vmem:[#allocation7 + $0x52] sm:$0x3] %vm360_vm2, %v562_v10 }
 0x31f   :  { %v498_v11 = vpop.permute.xlu1 %497 }
 0x320   :  { %519 = vst.msk [vmem:[#allocation7 + $0x1e] sm:$0x3] %vm360_vm2, %v498_v11 }
 0x321   :  { %v595_v12 = vpop.permute.xlu0 %594 }
 0x322   :  { %617 = vst.msk [vmem:[#allocation7 + $0x54] sm:$0x3] %vm360_vm2, %v595_v12 }
 0x323   :  { %v531_v13 = vpop.permute.xlu1 %530 }
 0x324   :  { %552 = vst.msk [vmem:[#allocation7 + $0x58] sm:$0x3] %vm360_vm2, %v531_v13 }
 0x325   :  { %v628_v14 = vpop.permute.xlu0 %627 }
 0x326   :  { %650 = vst.msk [vmem:[#allocation7 + $0x56] sm:$0x3] %vm360_vm2, %v628_v14 }
 0x327   :  { %v564_v15 = vpop.permute.xlu1 %563 }
 0x328   :  { %585 = vst.msk [vmem:[#allocation7 + $0x5a] sm:$0x3] %vm360_vm2, %v564_v15 }
 0x329   :  { %v636_v16 = vpop.permute.xlu0 %635 }
 0x32a   :  { %654 = vst.msk [vmem:[#allocation7 + $0x76] sm:$0x3] %vm360_vm2, %v636_v16 }
 0x32b   :  { %v597_v17 = vpop.permute.xlu1 %596 }
 0x32c   :  { %618 = vst.msk [vmem:[#allocation7 + $0x5c] sm:$0x3] %vm360_vm2, %v597_v17 }
 0x32f   :  { %v630_v18 = vpop.permute.xlu1 %629 }
 0x330   :  { %651 = vst.msk [vmem:[#allocation7 + $0x5e] sm:$0x3] %vm360_vm2, %v630_v18 }
 0x333   :  { %v638_v19 = vpop.permute.xlu1 %637 }
 0x334   :  { %655 = vst.msk [vmem:[#allocation7 + $0x7e] sm:$0x3] %vm360_vm2, %v638_v19 }
 0x335   :  { %788 = shalt.err (!%p785_p6)
}
 0x336   :  { %s789_s30 = scalar_lea.hbm %s1090_s4, 2048 }
 0x337   :  { %p790_p7 = scmp.ne.s32.totalorder %s1090_s4, %s789_s30  ;;  %p793_p8 = scmp.lt.u32.totalorder %s789_s30, %s1090_s4 }
 0x339   :  { %p795_p9 = pnand %p793_p8, %p790_p7 }
 0x33b   :  { %798 = shalt.err (!%p795_p9)
}
 0x33c   :  { %667 = dma.vmem_to_hbm [thread:$0]  %s662_s24, 2048, %s1090_s4, [#allocation4], %s806_s25, %s806_s25, %s807_s26  }
 0x33d   :  { %803 = dma.done.wait [#allocation4], 2048  }
 0x33e   :  { %804 = vsyncadd [#allocation4], 4294965248 }
 0x33f   :  { %671 = vsyncpa [#allocation3], 1 }
 0x340   :  { %672 = vsyncpa [#allocation6], 1 }
 0x341   :  { %673 = vsyncpa [#allocation4], 1 }

</bundles_post_ra>
